<compile_context>
chip_gen: v6e
topology: v6e:2x2x1
jax: 0.10.0
libtpu: 0.0.40
codegen_flags: <defaults>
</compile_context>

<pallas_src>
import functools

import jax
import jax.numpy as jnp
from jax.experimental import pallas as pl
from jax.experimental.pallas import tpu as pltpu


def _elu(v):
    # ELU with alpha=1.0 (torch.nn.ELU default); min() keeps exp() finite.
    return jnp.where(v > 0, v, jnp.exp(jnp.minimum(v, 0.0)) - 1.0)


def _relational_kernel(x_ref, y_ref, w1x_ref, w1y_ref, b1_ref,
                       w2_ref, b2_ref, w3_ref, b3_ref, out_ref, *, final_size):
    # x_ref / y_ref : (row_tile, object_dim) streamed activations
    # w*_ref        : (out, in) weights; w2/w3 are block-diagonal fused (x|y)
    # b*_ref        : fused biases, (out, 1), float32
    # out_ref       : (1, row_tile) lane-dense sigmoid output
    cdt = w2_ref.dtype  # MXU-operand / inner-elementwise dtype (bf16 or f32)

    # Layer 1, per branch (transposed compute: h^T = W1 @ x^T, rows -> lanes).
    hx = jax.lax.dot_general(
        w1x_ref[...], x_ref[...].astype(cdt),
        dimension_numbers=(((1,), (1,)), ((), ())),
        preferred_element_type=jnp.float32)                  # (hidden, rt)
    hy = jax.lax.dot_general(
        w1y_ref[...], y_ref[...].astype(cdt),
        dimension_numbers=(((1,), (1,)), ((), ())),
        preferred_element_type=jnp.float32)                  # (hidden, rt)
    h = jnp.concatenate([hx, hy], axis=0) + b1_ref[...]      # (2*hidden, rt) f32
    h = _elu(h.astype(cdt))                                   # inner ELU in cdt

    # Layer 2 (block-diagonal fused).
    h = jnp.dot(w2_ref[...], h, preferred_element_type=jnp.float32)
    h = _elu((h + b2_ref[...]).astype(cdt))

    # Layer 3 (block-diagonal fused); stay f32 from here on.
    h = jnp.dot(w3_ref[...], h, preferred_element_type=jnp.float32)
    h = _elu(h + b3_ref[...])                                 # (2*final, rt) f32

    # sigmoid(sum(h_x * h_y, feature)); feature axis = sublanes -> result is
    # already a lane-dense (1, row_tile) slab.
    hx3 = h[:final_size, :]
    hy3 = h[final_size:, :]
    s = jnp.sum(hx3 * hy3, axis=0, keepdims=True)             # (1, rt) f32
    out_ref[...] = 1.0 / (1.0 + jnp.exp(-s))                  # exact sigmoid


def baseline_relational_forward(x, y, params, *, row_tile=1024,
                                compute_dtype=jnp.bfloat16):
    """x, y: [batch, num_objects, object_dim] float32. Returns [batch, num_objects] f32.

    compute_dtype: MXU operand / inner-ELU dtype. Default bf16 (v6e/v7x);
    pass jnp.float32 on v5e (no bf16 VPU/EUP).
    """
    assert row_tile % 128 == 0, "row_tile must be a multiple of 128 (lane width)"
    batch, num_objects, object_dim = x.shape
    n = batch * num_objects

    (w1x, b1x, w2x, b2x, w3x, b3x,
     w1y, b1y, w2y, b2y, w3y, b3y) = params
    final_size = w3x.shape[0]

    def round_up(v, m):
        return ((v + m - 1) // m) * m

    # Tile selection: as large as requested (amortize grid overhead), but give
    # >= 2 grid steps when possible so the 'parallel' axis shards across both
    # v7x TensorCores.  VMEM stays a few MiB at any of these sizes.
    rt = max(128, min(row_tile, round_up(n, 128)))
    if n > 256:
        rt = min(rt, max(128, round_up(pl.cdiv(n, 2), 128)))
    n_tiles = pl.cdiv(n, rt)
    n_padded = n_tiles * rt

    cdt = compute_dtype
    # Per-branch layer-1 weights; block-diagonal fusion for layers 2-3 (tiny,
    # built once — keeps one matmul per layer for both branches).
    blkdiag = jax.scipy.linalg.block_diag
    w1xf = w1x.astype(cdt)                                    # (hidden, object_dim)
    w1yf = w1y.astype(cdt)
    w2f = blkdiag(w2x, w2y).astype(cdt)                       # (2*hidden, 2*hidden)
    w3f = blkdiag(w3x, w3y).astype(cdt)                       # (2*final,  2*hidden)
    b1f = jnp.concatenate([b1x, b1y]).reshape(-1, 1).astype(jnp.float32)
    b2f = jnp.concatenate([b2x, b2y]).reshape(-1, 1).astype(jnp.float32)
    b3f = jnp.concatenate([b3x, b3y]).reshape(-1, 1).astype(jnp.float32)

    # No wrapper-side concat / pad / cast of the activations: [n, object_dim]
    # is a free reshape, bf16 cast happens in-kernel, ragged last tile is
    # handled by Pallas block padding (outputs are row-local and sliced off).
    x2 = x.reshape(n, object_dim)
    y2 = y.reshape(n, object_dim)
    if n < rt:  # degenerate tiny-input case only; negligible copy
        x2 = jnp.pad(x2, ((0, rt - n), (0, 0)))
        y2 = jnp.pad(y2, ((0, rt - n), (0, 0)))

    def rep(shape):
        return pl.BlockSpec(shape, lambda i: (0,) * len(shape))

    kernel = functools.partial(_relational_kernel, final_size=final_size)

    out = pl.pallas_call(
        kernel,
        out_shape=jax.ShapeDtypeStruct((1, n_padded), jnp.float32),
        grid_spec=pltpu.PrefetchScalarGridSpec(
            num_scalar_prefetch=0,
            grid=(n_tiles,),
            in_specs=[
                pl.BlockSpec((rt, object_dim), lambda i: (i, 0)),   # x rows
                pl.BlockSpec((rt, object_dim), lambda i: (i, 0)),   # y rows
                rep(w1xf.shape), rep(w1yf.shape), rep(b1f.shape),
                rep(w2f.shape), rep(b2f.shape),
                rep(w3f.shape), rep(b3f.shape),
            ],
            out_specs=pl.BlockSpec((1, rt), lambda i: (0, i)),
        ),
        compiler_params=pltpu.CompilerParams(
            dimension_semantics=("parallel",)),
    )(x2, y2, w1xf, w1yf, b1f, w2f, b2f, w3f, b3f)

    return out.reshape(n_padded)[:n].reshape(batch, num_objects)


def init_params(key, object_dim, hidden_size=32, final_size=8):
    """torch.nn.Linear-style init: W (out,in), b (out,), uniform +/- 1/sqrt(fan_in)."""
    layer_dims = [(hidden_size, object_dim),
                  (hidden_size, hidden_size),
                  (final_size, hidden_size)] * 2          # x-branch then y-branch
    keys = jax.random.split(key, 2 * len(layer_dims))
    params = []
    k = 0
    for out_f, in_f in layer_dims:
        bound = 1.0 / (in_f ** 0.5)
        w = jax.random.uniform(keys[k], (out_f, in_f), jnp.float32, -bound, bound)
        b = jax.random.uniform(keys[k + 1], (out_f,), jnp.float32, -bound, bound)
        k += 2
        params.extend([w, b])
    return tuple(params)


def reference_forward(x, y, params):
    """Pure-JAX reference of the PyTorch forward for validation."""
    (w1x, b1x, w2x, b2x, w3x, b3x,
     w1y, b1y, w2y, b2y, w3y, b3y) = params
    hx = jax.nn.elu(x @ w1x.T + b1x)
    hx = jax.nn.elu(hx @ w2x.T + b2x)
    hx = jax.nn.elu(hx @ w3x.T + b3x)
    hy = jax.nn.elu(y @ w1y.T + b1y)
    hy = jax.nn.elu(hy @ w2y.T + b2y)
    hy = jax.nn.elu(hy @ w3y.T + b3y)
    return jax.nn.sigmoid(jnp.sum(hx * hy, axis=-1))


if __name__ == "__main__":
    object_dim, hidden_size, final_size = 16, 32, 8
    key = jax.random.PRNGKey(0)
    kx, ky, kp = jax.random.split(key, 3)
    params = init_params(kp, object_dim, hidden_size, final_size)

    # Test 1: tiny shape implied by the module (single tile), full-f32 path.
    batch, num_objects = 2, 8
    x = jax.random.normal(kx, (batch, num_objects, object_dim), jnp.float32)
    y = jax.random.normal(ky, (batch, num_objects, object_dim), jnp.float32)
    out = jax.block_until_ready(
        baseline_relational_forward(x, y, params, compute_dtype=jnp.float32))
    ref = reference_forward(x, y, params)
    assert out.shape == (batch, num_objects)
    assert jnp.allclose(out, ref, atol=2e-3, rtol=2e-3), "f32 mismatch (tiny)"

    # Test 2: multi-tile grid with a ragged last tile (n = 1200), f32 path.
    batch2, num_objects2 = 4, 300
    k2x, k2y = jax.random.split(jax.random.PRNGKey(1), 2)
    x2 = jax.random.normal(k2x, (batch2, num_objects2, object_dim), jnp.float32)
    y2 = jax.random.normal(k2y, (batch2, num_objects2, object_dim), jnp.float32)
    out2 = jax.block_until_ready(
        baseline_relational_forward(x2, y2, params, compute_dtype=jnp.float32))
    ref2 = reference_forward(x2, y2, params)
    assert out2.shape == (batch2, num_objects2)
    assert jnp.allclose(out2, ref2, atol=2e-3, rtol=2e-3), "f32 mismatch (multi-tile)"

    # Test 3: default bf16 MXU-operand / inner-ELU path (v6e/v7x), f32 accumulation.
    out3 = jax.block_until_ready(baseline_relational_forward(x2, y2, params))
    assert jnp.allclose(out3, ref2, atol=7e-2, rtol=7e-2), "bf16 mismatch"

    print("KERNEL_OK")
</pallas_src>

<mosaic_0001>
module attributes {stable_mosaic.version = 11 : i64} {
  func.func @_relational_kernel(%arg0: i32, %arg1: memref<128x16xf32, #tpu.memory_space<vmem>>, %arg2: memref<128x16xf32, #tpu.memory_space<vmem>>, %arg3: memref<32x16xf32, #tpu.memory_space<vmem>>, %arg4: memref<32x16xf32, #tpu.memory_space<vmem>>, %arg5: memref<64x1xf32, #tpu.memory_space<vmem>>, %arg6: memref<64x64xf32, #tpu.memory_space<vmem>>, %arg7: memref<64x1xf32, #tpu.memory_space<vmem>>, %arg8: memref<16x64xf32, #tpu.memory_space<vmem>>, %arg9: memref<16x1xf32, #tpu.memory_space<vmem>>, %arg10: memref<1x128xf32, #tpu.memory_space<vmem>>) attributes {dimension_semantics = [#tpu.dimension_semantics<parallel>], iteration_bounds = array<i64: 1>, scalar_prefetch = 0 : i64, scratch_operands = 0 : i64, tpu.core_type = #tpu.core_type<tc>, window_params = [{transform_indices = @transform_0, window_bounds = array<i64: 128, 16>}, {transform_indices = @transform_1, window_bounds = array<i64: 128, 16>}, {pipeline_mode = #tpu.pipeline_mode<synchronous>, transform_indices = @transform_2, window_bounds = array<i64: 32, 16>}, {pipeline_mode = #tpu.pipeline_mode<synchronous>, transform_indices = @transform_3, window_bounds = array<i64: 32, 16>}, {pipeline_mode = #tpu.pipeline_mode<synchronous>, transform_indices = @transform_4, window_bounds = array<i64: 64, 1>}, {pipeline_mode = #tpu.pipeline_mode<synchronous>, transform_indices = @transform_5, window_bounds = array<i64: 64, 64>}, {pipeline_mode = #tpu.pipeline_mode<synchronous>, transform_indices = @transform_6, window_bounds = array<i64: 64, 1>}, {pipeline_mode = #tpu.pipeline_mode<synchronous>, transform_indices = @transform_7, window_bounds = array<i64: 16, 64>}, {pipeline_mode = #tpu.pipeline_mode<synchronous>, transform_indices = @transform_8, window_bounds = array<i64: 16, 1>}, {transform_indices = @transform_9, window_bounds = array<i64: 1, 128>}]} {
    %c0 = arith.constant 0 : index
    %c0_0 = arith.constant 0 : index
    %0 = vector.load %arg3[%c0, %c0_0] : memref<32x16xf32, #tpu.memory_space<vmem>>, vector<32x16xf32>
    %c0_1 = arith.constant 0 : index
    %c0_2 = arith.constant 0 : index
    %1 = vector.load %arg1[%c0_1, %c0_2] : memref<128x16xf32, #tpu.memory_space<vmem>>, vector<128x16xf32>
    %cst = arith.constant dense<0.000000e+00> : vector<32x128xf32>
    %2 = tpu.matmul %0, %1, %cst {dimension_numbers = #tpu.dot_dimension_numbers<[1], [1], [0], [0], [0, 0, 1, 0], [], []>} : vector<32x16xf32>, vector<128x16xf32>, vector<32x128xf32> -> vector<32x128xf32>
    %c0_3 = arith.constant 0 : index
    %c0_4 = arith.constant 0 : index
    %3 = vector.load %arg4[%c0_3, %c0_4] : memref<32x16xf32, #tpu.memory_space<vmem>>, vector<32x16xf32>
    %c0_5 = arith.constant 0 : index
    %c0_6 = arith.constant 0 : index
    %4 = vector.load %arg2[%c0_5, %c0_6] : memref<128x16xf32, #tpu.memory_space<vmem>>, vector<128x16xf32>
    %cst_7 = arith.constant dense<0.000000e+00> : vector<32x128xf32>
    %5 = tpu.matmul %3, %4, %cst_7 {dimension_numbers = #tpu.dot_dimension_numbers<[1], [1], [0], [0], [0, 0, 1, 0], [], []>} : vector<32x16xf32>, vector<128x16xf32>, vector<32x128xf32> -> vector<32x128xf32>
    %6 = tpu.concatenate %2, %5 in 0 : vector<32x128xf32>, vector<32x128xf32> -> vector<64x128xf32>
    %c0_8 = arith.constant 0 : index
    %c0_9 = arith.constant 0 : index
    %7 = vector.load %arg5[%c0_8, %c0_9] : memref<64x1xf32, #tpu.memory_space<vmem>>, vector<64x1xf32>
    %8 = vector.broadcast %7 : vector<64x1xf32> to vector<64x128xf32>
    %9 = arith.addf %6, %8 : vector<64x128xf32>
    %cst_10 = arith.constant 0.000000e+00 : f32
    %10 = vector.broadcast %cst_10 : f32 to vector<64x128xf32>
    %11 = arith.cmpf ogt, %9, %10 : vector<64x128xf32>
    %cst_11 = arith.constant 0.000000e+00 : f32
    %12 = vector.broadcast %cst_11 : f32 to vector<64x128xf32>
    %13 = arith.minimumf %9, %12 : vector<64x128xf32>
    %14 = math.exp %13 : vector<64x128xf32>
    %cst_12 = arith.constant 1.000000e+00 : f32
    %15 = vector.broadcast %cst_12 : f32 to vector<64x128xf32>
    %16 = arith.subf %14, %15 : vector<64x128xf32>
    %17 = arith.select %11, %9, %16 : vector<64x128xi1>, vector<64x128xf32>
    %c0_13 = arith.constant 0 : index
    %c0_14 = arith.constant 0 : index
    %18 = vector.load %arg6[%c0_13, %c0_14] : memref<64x64xf32, #tpu.memory_space<vmem>>, vector<64x64xf32>
    %cst_15 = arith.constant dense<0.000000e+00> : vector<64x128xf32>
    %19 = tpu.matmul %18, %17, %cst_15 {dimension_numbers = #tpu.dot_dimension_numbers<[1], [0], [0], [1], [0, 0, 1, 1], [], []>} : vector<64x64xf32>, vector<64x128xf32>, vector<64x128xf32> -> vector<64x128xf32>
    %c0_16 = arith.constant 0 : index
    %c0_17 = arith.constant 0 : index
    %20 = vector.load %arg7[%c0_16, %c0_17] : memref<64x1xf32, #tpu.memory_space<vmem>>, vector<64x1xf32>
    %21 = vector.broadcast %20 : vector<64x1xf32> to vector<64x128xf32>
    %22 = arith.addf %19, %21 : vector<64x128xf32>
    %cst_18 = arith.constant 0.000000e+00 : f32
    %23 = vector.broadcast %cst_18 : f32 to vector<64x128xf32>
    %24 = arith.cmpf ogt, %22, %23 : vector<64x128xf32>
    %cst_19 = arith.constant 0.000000e+00 : f32
    %25 = vector.broadcast %cst_19 : f32 to vector<64x128xf32>
    %26 = arith.minimumf %22, %25 : vector<64x128xf32>
    %27 = math.exp %26 : vector<64x128xf32>
    %cst_20 = arith.constant 1.000000e+00 : f32
    %28 = vector.broadcast %cst_20 : f32 to vector<64x128xf32>
    %29 = arith.subf %27, %28 : vector<64x128xf32>
    %30 = arith.select %24, %22, %29 : vector<64x128xi1>, vector<64x128xf32>
    %c0_21 = arith.constant 0 : index
    %c0_22 = arith.constant 0 : index
    %31 = vector.load %arg8[%c0_21, %c0_22] : memref<16x64xf32, #tpu.memory_space<vmem>>, vector<16x64xf32>
    %cst_23 = arith.constant dense<0.000000e+00> : vector<16x128xf32>
    %32 = tpu.matmul %31, %30, %cst_23 {dimension_numbers = #tpu.dot_dimension_numbers<[1], [0], [0], [1], [0, 0, 1, 1], [], []>} : vector<16x64xf32>, vector<64x128xf32>, vector<16x128xf32> -> vector<16x128xf32>
    %c0_24 = arith.constant 0 : index
    %c0_25 = arith.constant 0 : index
    %33 = vector.load %arg9[%c0_24, %c0_25] : memref<16x1xf32, #tpu.memory_space<vmem>>, vector<16x1xf32>
    %34 = vector.broadcast %33 : vector<16x1xf32> to vector<16x128xf32>
    %35 = arith.addf %32, %34 : vector<16x128xf32>
    %cst_26 = arith.constant 0.000000e+00 : f32
    %36 = vector.broadcast %cst_26 : f32 to vector<16x128xf32>
    %37 = arith.cmpf ogt, %35, %36 : vector<16x128xf32>
    %cst_27 = arith.constant 0.000000e+00 : f32
    %38 = vector.broadcast %cst_27 : f32 to vector<16x128xf32>
    %39 = arith.minimumf %35, %38 : vector<16x128xf32>
    %40 = math.exp %39 : vector<16x128xf32>
    %cst_28 = arith.constant 1.000000e+00 : f32
    %41 = vector.broadcast %cst_28 : f32 to vector<16x128xf32>
    %42 = arith.subf %40, %41 : vector<16x128xf32>
    %43 = arith.select %37, %35, %42 : vector<16x128xi1>, vector<16x128xf32>
    %44 = vector.extract_strided_slice %43 {offsets = [0, 0], sizes = [8, 128], strides = [1, 1]} : vector<16x128xf32> to vector<8x128xf32>
    %45 = vector.extract_strided_slice %43 {offsets = [8, 0], sizes = [8, 128], strides = [1, 1]} : vector<16x128xf32> to vector<8x128xf32>
    %46 = arith.mulf %44, %45 : vector<8x128xf32>
    %cst_29 = arith.constant dense<0.000000e+00> : vector<128xf32>
    %47 = vector.multi_reduction <add>, %46, %cst_29 [0] : vector<8x128xf32> to vector<128xf32>
    %48 = vector.shape_cast %47 : vector<128xf32> to vector<1x128xf32>
    %cst_30 = arith.constant 0.000000e+00 : f32
    %49 = vector.broadcast %cst_30 : f32 to vector<1x128xf32>
    %50 = arith.subf %49, %48 : vector<1x128xf32>
    %51 = math.exp %50 : vector<1x128xf32>
    %cst_31 = arith.constant 1.000000e+00 : f32
    %52 = vector.broadcast %cst_31 : f32 to vector<1x128xf32>
    %53 = arith.addf %52, %51 : vector<1x128xf32>
    %cst_32 = arith.constant 1.000000e+00 : f32
    %54 = vector.broadcast %cst_32 : f32 to vector<1x128xf32>
    %55 = arith.divf %54, %53 : vector<1x128xf32>
    %c0_33 = arith.constant 0 : index
    %c0_34 = arith.constant 0 : index
    %56 = vector.load %arg10[%c0_33, %c0_34] : memref<1x128xf32, #tpu.memory_space<vmem>>, vector<1x128xf32>
    tpu.vector_store %arg10[%c0_33, %c0_34], %55 {strides = array<i32>} : memref<1x128xf32, #tpu.memory_space<vmem>>, vector<1x128xf32>,
    return
  }
  func.func @transform_0(%arg0: i32) -> (i32, i32) {
    %c0_i32 = arith.constant 0 : i32
    %c0_i32_0 = arith.constant 0 : i32
    return %arg0, %c0_i32 : i32, i32
  }
  func.func @transform_1(%arg0: i32) -> (i32, i32) {
    %c0_i32 = arith.constant 0 : i32
    %c0_i32_0 = arith.constant 0 : i32
    return %arg0, %c0_i32 : i32, i32
  }
  func.func @transform_2(%arg0: i32) -> (i32, i32) {
    %c0_i32 = arith.constant 0 : i32
    %c0_i32_0 = arith.constant 0 : i32
    %c0_i32_1 = arith.constant 0 : i32
    return %c0_i32, %c0_i32_0 : i32, i32
  }
  func.func @transform_3(%arg0: i32) -> (i32, i32) {
    %c0_i32 = arith.constant 0 : i32
    %c0_i32_0 = arith.constant 0 : i32
    %c0_i32_1 = arith.constant 0 : i32
    return %c0_i32, %c0_i32_0 : i32, i32
  }
  func.func @transform_4(%arg0: i32) -> (i32, i32) {
    %c0_i32 = arith.constant 0 : i32
    %c0_i32_0 = arith.constant 0 : i32
    %c0_i32_1 = arith.constant 0 : i32
    return %c0_i32, %c0_i32_0 : i32, i32
  }
  func.func @transform_5(%arg0: i32) -> (i32, i32) {
    %c0_i32 = arith.constant 0 : i32
    %c0_i32_0 = arith.constant 0 : i32
    %c0_i32_1 = arith.constant 0 : i32
    return %c0_i32, %c0_i32_0 : i32, i32
  }
  func.func @transform_6(%arg0: i32) -> (i32, i32) {
    %c0_i32 = arith.constant 0 : i32
    %c0_i32_0 = arith.constant 0 : i32
    %c0_i32_1 = arith.constant 0 : i32
    return %c0_i32, %c0_i32_0 : i32, i32
  }
  func.func @transform_7(%arg0: i32) -> (i32, i32) {
    %c0_i32 = arith.constant 0 : i32
    %c0_i32_0 = arith.constant 0 : i32
    %c0_i32_1 = arith.constant 0 : i32
    return %c0_i32, %c0_i32_0 : i32, i32
  }
  func.func @transform_8(%arg0: i32) -> (i32, i32) {
    %c0_i32 = arith.constant 0 : i32
    %c0_i32_0 = arith.constant 0 : i32
    %c0_i32_1 = arith.constant 0 : i32
    return %c0_i32, %c0_i32_0 : i32, i32
  }
  func.func @transform_9(%arg0: i32) -> (i32, i32) {
    %c0_i32 = arith.constant 0 : i32
    %c0_i32_0 = arith.constant 0 : i32
    return %c0_i32, %arg0 : i32, i32
  }
}

</mosaic_0001>

<bundles_post_ra>
// kernel: tpu_custom_call.1
= control target key start
LH: loop header
LB: loop body
LE: loop exit
PB: predicated region body
PF: predicated region fallthrough
CT: control target
= control target key end

     0   :  { %vm53_vm0 = vcmask 130048   ;;  %v1160_v6 = vmov 0   ;;  %s1546_s0 = inlined_call_operand.vmem [shape: f32[128,16], index: 0, kind: input, shape index: {}]   ;;  %s1547_s1 = inlined_call_operand.vmem [shape: f32[128,16], index: 1, kind: input, shape index: {}]   ;;  %s1548_s2 = inlined_call_operand.vmem [shape: f32[32,16], index: 2, kind: input, shape index: {}]   ;;  %s1549_s3 = inlined_call_operand.vmem [shape: f32[32,16], index: 3, kind: input, shape index: {}]   ;;  %s1550_s4 = inlined_call_operand.vmem [shape: f32[64,1], index: 4, kind: input, shape index: {}]   ;;  %s1551_s5 = inlined_call_operand.vmem [shape: f32[64,64], index: 5, kind: input, shape index: {}]   ;;  %s1552_s6 = inlined_call_operand.vmem [shape: f32[64,1], index: 6, kind: input, shape index: {}]   ;;  %s1553_s7 = inlined_call_operand.vmem [shape: f32[16,64], index: 7, kind: input, shape index: {}]   ;;  %s1554_s8 = inlined_call_operand.vmem [shape: f32[16,1], index: 8, kind: input, shape index: {}]   ;;  %s1555_s9 = inlined_call_operand.hbm [shape: f32[1,128], index: 9, kind: output, shape index: {}]  }
   0x1   :  { %v52_v0 = vld [vmem:[%s1546_s0 + $0x78] sm:$0xff]  ;;  %v51_v2 = vld [vmem:[%s1546_s0 + $0x70] sm:$0xff]  ;;  %v50_v4 = vld [vmem:[%s1546_s0 + $0x68] sm:$0xff]  ;;  %1096 = vset.pattern.permute.xlu0 %v1160_v6  ;;  %1097 = vset.pattern.permute.xlu1 %v1160_v6 }
   0x2   :  { %v218_v1 = vld [vmem:[%s1547_s1 + $0x78] sm:$0xff]  ;;  %971 = vmatprep.subr.msk.mxu0 %vm53_vm0, %v52_v0  ;;  %v217_v3 = vld [vmem:[%s1547_s1 + $0x70] sm:$0xff]  ;;  %v216_v5 = vld [vmem:[%s1547_s1 + $0x68] sm:$0xff] }
   0x3   :  { %1009 = vmatprep.subr.msk.mxu1 %vm53_vm0, %v218_v1  ;;  %972 = vmatpush3.xpose.msk.msra.mxu0 %vm53_vm0, %v52_v0  ;;  %v49_v7 = vld [vmem:[%s1546_s0 + $0x60] sm:$0xff]  ;;  %v48_v11 = vld [vmem:[%s1546_s0 + $0x58] sm:$0xff]  ;;  %v369_v14 = vld [vmem:[%s1550_s4 + $0x28] sm:$0xff] }
   0x4   :  { %1010 = vmatpush3.xpose.msk.msra.mxu1 %vm53_vm0, %v218_v1  ;;  %973 = vmatprep.subr.msk.mxu0 %vm53_vm0, %v51_v2  ;;  %v215_v8 = vld [vmem:[%s1547_s1 + $0x60] sm:$0xff]  ;;  %v214_v12 = vld [vmem:[%s1547_s1 + $0x58] sm:$0xff]  ;;  %v47_v15 = vld [vmem:[%s1546_s0 + $0x50] sm:$0xff] }
   0x5   :  { %1011 = vmatprep.subr.msk.mxu1 %vm53_vm0, %v217_v3  ;;  %v33_v9 = vld [vmem:[%s1548_s2] sm:$0xff]  ;;  %v371_v13 = vld [vmem:[%s1550_s4 + $0x38] sm:$0xff]  ;;  %v213_v16 = vld [vmem:[%s1547_s1 + $0x50] sm:$0xff]  ;;  %399 = vperm.xlu1 %1097, %v369_v14  }
   0x6   :  { %v199_v10 = vld [vmem:[%s1549_s3] sm:$0xff]  ;;  %1003 = vmatprep.mubr.msk.f32.mxu0 %vm53_vm0, %v33_v9  ;;  %409 = vperm.xlu0 %1096, %v371_v13   ;;  %v370_v17 = vld [vmem:[%s1550_s4 + $0x30] sm:$0xff] }
   0x7   :  { %974 = vmatpush3.xpose.msk.msra.mxu0 %vm53_vm0, %v51_v2  ;;  %1041 = vmatprep.mubr.msk.f32.mxu1 %vm53_vm0, %v199_v10  ;;  %v368_v18 = vld [vmem:[%s1550_s4 + $0x20] sm:$0xff] }
   0x8   :  { %1012 = vmatpush3.xpose.msk.msra.mxu1 %vm53_vm0, %v217_v3  ;;  %975 = vmatprep.subr.msk.mxu0 %vm53_vm0, %v50_v4 }
   0x9   :  { %1013 = vmatprep.subr.msk.mxu1 %vm53_vm0, %v216_v5 }
   0xb   :  { %976 = vmatpush3.xpose.msk.msra.mxu0 %vm53_vm0, %v50_v4 }
   0xc   :  { %1014 = vmatpush3.xpose.msk.msra.mxu1 %vm53_vm0, %v216_v5  ;;  %977 = vmatprep.subr.msk.mxu0 %vm53_vm0, %v49_v7 }
   0xd   :  { %1015 = vmatprep.subr.msk.mxu1 %vm53_vm0, %v215_v8 }
   0xf   :  { %978 = vmatpush3.xpose.msk.msra.mxu0 %vm53_vm0, %v49_v7 }
  0x10   :  { %1016 = vmatpush3.xpose.msk.msra.mxu1 %vm53_vm0, %v215_v8  ;;  %979 = vmatprep.subr.msk.mxu0 %vm53_vm0, %v48_v11 }
  0x11   :  { %1017 = vmatprep.subr.msk.mxu1 %vm53_vm0, %v214_v12 }
  0x13   :  { %980 = vmatpush3.xpose.msk.msra.mxu0 %vm53_vm0, %v48_v11 }
  0x14   :  { %1018 = vmatpush3.xpose.msk.msra.mxu1 %vm53_vm0, %v214_v12  ;;  %981 = vmatprep.subr.msk.mxu0 %vm53_vm0, %v47_v15 }
  0x15   :  { %1019 = vmatprep.subr.msk.mxu1 %vm53_vm0, %v213_v16 }
  0x16   :  { %14 = vsyncpa [#allocation3], 0  ;;  %v46_v19 = vld [vmem:[%s1546_s0 + $0x48] sm:$0xff]  ;;  %404 = vperm.xlu0 %1096, %v370_v17   ;;  %394 = vperm.xlu1 %1097, %v368_v18   ;;  %v367_v21 = vld [vmem:[%s1550_s4 + $0x18] sm:$0xff]  ;;  %vm524_vm1 = vcmask 523264  }
  0x17   :  { %v212_v20 = vld [vmem:[%s1547_s1 + $0x48] sm:$0xff]  ;;  %v366_v22 = vld [vmem:[%s1550_s4 + $0x10] sm:$0xff]  ;;  %982 = vmatpush3.xpose.msk.msra.mxu0 %vm53_vm0, %v47_v15  ;;  %v45_v23 = vld [vmem:[%s1546_s0 + $0x40] sm:$0xff] }
  0x18   :  { %1020 = vmatpush3.xpose.msk.msra.mxu1 %vm53_vm0, %v213_v16  ;;  %983 = vmatprep.subr.msk.mxu0 %vm53_vm0, %v46_v19  ;;  %v211_v24 = vld [vmem:[%s1547_s1 + $0x40] sm:$0xff]  ;;  %v365_v25 = vld [vmem:[%s1550_s4 + $0x8] sm:$0xff]  ;;  %v44_v27 = vld [vmem:[%s1546_s0 + $0x38] sm:$0xff] }
  0x19   :  { %1021 = vmatprep.subr.msk.mxu1 %vm53_vm0, %v212_v20  ;;  %v364_v26 = vld [vmem:[%s1550_s4] sm:$0xff]  ;;  %v210_v28 = vld [vmem:[%s1547_s1 + $0x38] sm:$0xff]  ;;  %v482_v30 = vld [vmem:[%s1552_s6 + $0x30] sm:$0xff] }
  0x1a   :  { %389 = vperm.xlu0 %1096, %v367_v21   ;;  %384 = vperm.xlu1 %1097, %v366_v22   ;;  %v483_v29 = vld [vmem:[%s1552_s6 + $0x38] sm:$0xff]  ;;  %v43_v31 = vld [vmem:[%s1546_s0 + $0x30] sm:$0xff]  ;;  %v481_v33 = vld [vmem:[%s1552_s6 + $0x28] sm:$0xff] }
  0x1b   :  { %984 = vmatpush3.xpose.msk.msra.mxu0 %vm53_vm0, %v46_v19  ;;  %v209_v32 = vld [vmem:[%s1547_s1 + $0x30] sm:$0xff]  ;;  %v480_v34 = vld [vmem:[%s1552_s6 + $0x20] sm:$0xff]  ;;  %v42_v35 = vld [vmem:[%s1546_s0 + $0x28] sm:$0xff] }
  0x1c   :  { %1022 = vmatpush3.xpose.msk.msra.mxu1 %vm53_vm0, %v212_v20  ;;  %985 = vmatprep.subr.msk.mxu0 %vm53_vm0, %v45_v23  ;;  %v208_v36 = vld [vmem:[%s1547_s1 + $0x28] sm:$0xff]  ;;  %v479_v37 = vld [vmem:[%s1552_s6 + $0x18] sm:$0xff]  ;;  %v478_v38 = vld [vmem:[%s1552_s6 + $0x10] sm:$0xff] }
  0x1d   :  { %1023 = vmatprep.subr.msk.mxu1 %vm53_vm0, %v211_v24  ;;  %v41_v39 = vld [vmem:[%s1546_s0 + $0x20] sm:$0xff]  ;;  %v477_v41 = vld [vmem:[%s1552_s6 + $0x8] sm:$0xff]  ;;  %v40_v43 = vld [vmem:[%s1546_s0 + $0x18] sm:$0xff] }
  0x1e   :  { %379 = vperm.xlu0 %1096, %v365_v25   ;;  %374 = vperm.xlu1 %1097, %v364_v26   ;;  %v207_v40 = vld [vmem:[%s1547_s1 + $0x20] sm:$0xff]  ;;  %v206_v44 = vld [vmem:[%s1547_s1 + $0x18] sm:$0xff]  ;;  %v705_v46 = vld [vmem:[%s1554_s8 + $0x8] sm:$0xff] }
  0x1f   :  { %986 = vmatpush3.xpose.msk.msra.mxu0 %vm53_vm0, %v45_v23  ;;  %v476_v42 = vld [vmem:[%s1552_s6] sm:$0xff]  ;;  %v39_v47 = vld [vmem:[%s1546_s0 + $0x10] sm:$0xff]  ;;  %v38_v49 = vld [vmem:[%s1546_s0 + $0x8] sm:$0xff] }
  0x20   :  { %1024 = vmatpush3.xpose.msk.msra.mxu1 %vm53_vm0, %v211_v24  ;;  %987 = vmatprep.subr.msk.mxu0 %vm53_vm0, %v44_v27  ;;  %v704_v45 = vld [vmem:[%s1554_s8] sm:$0xff]  ;;  %v205_v48 = vld [vmem:[%s1547_s1 + $0x10] sm:$0xff]  ;;  %v204_v50 = vld [vmem:[%s1547_s1 + $0x8] sm:$0xff] }
  0x21   :  { %1025 = vmatprep.subr.msk.mxu1 %vm53_vm0, %v210_v28  ;;  %v37_v51 = vld [vmem:[%s1546_s0] sm:$0xff]  ;;  %v34_v53 = vld [vmem:[%s1548_s2 + $0x8] sm:$0xff]  ;;  %v35_v55 = vld [vmem:[%s1548_s2 + $0x10] sm:$0xff] }
  0x22   :  { %521 = vperm.xlu0 %1096, %v483_v29   ;;  %516 = vperm.xlu1 %1097, %v482_v30   ;;  %v203_v52 = vld [vmem:[%s1547_s1] sm:$0xff]  ;;  %v200_v54 = vld [vmem:[%s1549_s3 + $0x8] sm:$0xff]  ;;  %v201_v56 = vld [vmem:[%s1549_s3 + $0x10] sm:$0xff] }
  0x23   :  { %988 = vmatpush3.xpose.msk.msra.mxu0 %vm53_vm0, %v44_v27  ;;  %v36_v57 = vld [vmem:[%s1548_s2 + $0x18] sm:$0xff]  ;;  %v468_v59 = vld [vmem:[%s1551_s5] sm:$0xff] }
  0x24   :  { %1026 = vmatpush3.xpose.msk.msra.mxu1 %vm53_vm0, %v210_v28  ;;  %989 = vmatprep.subr.msk.mxu0 %vm53_vm0, %v43_v31  ;;  %v202_v58 = vld [vmem:[%s1549_s3 + $0x18] sm:$0xff] }
  0x25   :  { %1027 = vmatprep.subr.msk.mxu1 %vm53_vm0, %v209_v32 }
  0x26   :  { %511 = vperm.xlu0 %1096, %v481_v33   ;;  %506 = vperm.xlu1 %1097, %v480_v34  }
  0x27   :  { %990 = vmatpush3.xpose.msk.msra.mxu0 %vm53_vm0, %v43_v31 }
  0x28   :  { %1028 = vmatpush3.xpose.msk.msra.mxu1 %vm53_vm0, %v209_v32  ;;  %991 = vmatprep.subr.msk.mxu0 %vm53_vm0, %v42_v35 }
  0x29   :  { %1029 = vmatprep.subr.msk.mxu1 %vm53_vm0, %v208_v36 }
  0x2a   :  { %501 = vperm.xlu0 %1096, %v479_v37   ;;  %496 = vperm.xlu1 %1097, %v478_v38  }
  0x2b   :  { %992 = vmatpush3.xpose.msk.msra.mxu0 %vm53_vm0, %v42_v35 }
  0x2c   :  { %1030 = vmatpush3.xpose.msk.msra.mxu1 %vm53_vm0, %v208_v36  ;;  %993 = vmatprep.subr.msk.mxu0 %vm53_vm0, %v41_v39 }
  0x2d   :  { %1031 = vmatprep.subr.msk.mxu1 %vm53_vm0, %v207_v40 }
  0x2e   :  { %491 = vperm.xlu0 %1096, %v477_v41   ;;  %486 = vperm.xlu1 %1097, %v476_v42  }
  0x2f   :  { %994 = vmatpush3.xpose.msk.msra.mxu0 %vm53_vm0, %v41_v39 }
  0x30   :  { %1032 = vmatpush3.xpose.msk.msra.mxu1 %vm53_vm0, %v207_v40  ;;  %995 = vmatprep.subr.msk.mxu0 %vm53_vm0, %v40_v43 }
  0x31   :  { %1033 = vmatprep.subr.msk.mxu1 %vm53_vm0, %v206_v44 }
  0x32   :  { %708 = vperm.xlu0 %1096, %v704_v45   ;;  %713 = vperm.xlu1 %1097, %v705_v46  }
  0x33   :  { %996 = vmatpush3.xpose.msk.msra.mxu0 %vm53_vm0, %v40_v43 }
  0x34   :  { %1034 = vmatpush3.xpose.msk.msra.mxu1 %vm53_vm0, %v206_v44  ;;  %997 = vmatprep.subr.msk.mxu0 %vm53_vm0, %v39_v47 }
  0x35   :  { %1035 = vmatprep.subr.msk.mxu1 %vm53_vm0, %v205_v48 }
  0x37   :  { %998 = vmatpush3.xpose.msk.msra.mxu0 %vm53_vm0, %v39_v47 }
  0x38   :  { %1036 = vmatpush3.xpose.msk.msra.mxu1 %vm53_vm0, %v205_v48  ;;  %999 = vmatprep.subr.msk.mxu0 %vm53_vm0, %v38_v49 }
  0x39   :  { %1037 = vmatprep.subr.msk.mxu1 %vm53_vm0, %v204_v50 }
  0x3b   :  { %1000 = vmatpush3.xpose.msk.msra.mxu0 %vm53_vm0, %v38_v49 }
  0x3c   :  { %1038 = vmatpush3.xpose.msk.msra.mxu1 %vm53_vm0, %v204_v50  ;;  %1001 = vmatprep.subr.msk.mxu0 %vm53_vm0, %v37_v51 }
  0x3d   :  { %1039 = vmatprep.subr.msk.mxu1 %vm53_vm0, %v203_v52 }
  0x3f   :  { %1002 = vmatpush3.xpose.msk.msra.mxu0 %vm53_vm0, %v37_v51 }
  0x40   :  { %1040 = vmatpush3.xpose.msk.msra.mxu1 %vm53_vm0, %v203_v52 }
  0x42   :  { %1004 = vmatmul.mubr.msk.f32.vlgmr.msra.gmra.mxu0 %vm53_vm0, %v34_v53 }
  0x43   :  { %1042 = vmatmul.mubr.msk.f32.vlgmr.msra.gmra.mxu1 %vm53_vm0, %v200_v54  ;;  %1006 = vmatprep.mubr.msk.f32.mxu0 %vm53_vm0, %v35_v55 }
  0x44   :  { %1044 = vmatprep.mubr.msk.f32.mxu1 %vm53_vm0, %v201_v56 }
  0x46   :  { %1007 = vmatmul.mubr.msk.f32.gmra.mxu0 %vm53_vm0, %v36_v57 }
  0x47   :  { %1045 = vmatmul.mubr.msk.f32.gmra.mxu1 %vm53_vm0, %v202_v58  ;;  %1063 = vmatprep.mubr.msk.f32.mxu0 %vm524_vm1, %v468_v59 }
  0x80   :  { %v400_v61 = vpop.permute.xlu1 %399 }
  0x81   :  { %v410_v60 = vpop.permute.xlu0 %409 }
  0x91   :  { %v405_v62 = vpop.permute.xlu0 %404  ;;  %v395_v63 = vpop.permute.xlu1 %394 }
  0x95   :  { %v390_v2 = vpop.permute.xlu0 %389  ;;  %v385_v6 = vpop.permute.xlu1 %384 }
  0x99   :  { %v380_v17 = vpop.permute.xlu0 %379  ;;  %v375_v23 = vpop.permute.xlu1 %374 }
 0x102   :  { %v1005_v0 = vpop.f32.mrf.mxu0 }
 0x103   :  { %v1043_v1 = vpop.f32.mrf.mxu1  ;;  %v1469_v21 = vadd.f32 %v1005_v0, %v380_v17  ;;  %v473_v0 = vld [vmem:[%s1551_s5 + $0x28] sm:$0xff] }
 0x104   :  { %v417_v3 = vadd.f32 %v1043_v1, %v400_v61  ;;  %v180_v4 = vpop.f32.mrf.mxu0  ;;  %v470_v61 = vld [vmem:[%s1551_s5 + $0x10] sm:$0xff] }
 0x105   :  { %v345_v5 = vpop.f32.mrf.mxu1  ;;  %v1472_v27 = vadd.f32 %v375_v23, %v180_v4  ;;  %v429_v30 = vmin.f32 %v1469_v21, 0.0  ;;  %vm421_vm8 = vcmp.gt.f32.partialorder %v1469_v21, 0.0  ;;  %v474_v1 = vld [vmem:[%s1551_s5 + $0x30] sm:$0xff]  ;;  %v522_v4 = vpop.permute.xlu0 %521 }
 0x106   :  { %v1462_v7 = vadd.f32 %v395_v63, %v345_v5  ;;  %v433_v8 = vmin.f32 %v417_v3, 0.0  ;;  %v1008_v9 = vpop.f32.mrf.mxu0  ;;  %vm425_vm4 = vcmp.gt.f32.partialorder %v417_v3, 0.0  ;;  %v472_v63 = vld [vmem:[%s1551_s5 + $0x20] sm:$0xff]  ;;  %v517_v5 = vpop.permute.xlu1 %516 }
 0x107   :  { %v1046_v10 = vpop.f32.mrf.mxu1  ;;  %v1465_v12 = vadd.f32 %v1008_v9, %v390_v2  ;;  %v428_v32 = vmin.f32 %v1472_v27, 0.0  ;;  %v438_v34 = vmul.f32 1.442695, %v429_v30  ;;  %vm420_vm9 = vcmp.gt.f32.partialorder %v1472_v27, 0.0  ;;  %v475_v2 = vld [vmem:[%s1551_s5 + $0x38] sm:$0xff] }
 0x108   :  { %v432_v11 = vmin.f32 %v1462_v7, 0.0  ;;  %v419_v13 = vadd.f32 %v1046_v10, %v410_v60  ;;  %v190_v14 = vpop.f32.mrf.mxu0  ;;  %v446_v18 = vmul.f32 1.442695, %v433_v8  ;;  %vm424_vm5 = vcmp.gt.f32.partialorder %v1462_v7, 0.0  ;;  %v469_v60 = vld [vmem:[%s1551_s5 + $0x8] sm:$0xff] }
 0x109   :  { %v355_v15 = vpop.f32.mrf.mxu1  ;;  %v1467_v16 = vadd.f32 %v385_v6, %v190_v14  ;;  %v431_v22 = vmin.f32 %v1465_v12, 0.0  ;;  %v436_v35 = vmul.f32 1.442695, %v428_v32  ;;  %vm423_vm6 = vcmp.gt.f32.partialorder %v1465_v12, 0.0 }
 0x10a   :  { %v435_v19 = vmin.f32 %v419_v13, 0.0  ;;  %v418_v20 = vadd.f32 %v405_v62, %v355_v15  ;;  %v444_v24 = vmul.f32 1.442695, %v432_v11  ;;  %1098 = vpow2.f32 %v446_v18  ;;  %v471_v62 = vld [vmem:[%s1551_s5 + $0x18] sm:$0xff]  ;;  %v507_v9 = vpop.permute.xlu1 %506 }
 0x10b   :  { %v430_v28 = vmin.f32 %v1467_v16, 0.0  ;;  %v442_v31 = vmul.f32 1.442695, %v431_v22  ;;  %vm427_vm2 = vcmp.gt.f32.partialorder %v419_v13, 0.0  ;;  %vm422_vm7 = vcmp.gt.f32.partialorder %v1467_v16, 0.0 }
 0x10c   :  { %v450_v25 = vmul.f32 1.442695, %v435_v19  ;;  %v434_v26 = vmin.f32 %v418_v20, 0.0  ;;  %vm426_vm3 = vcmp.gt.f32.partialorder %v418_v20, 0.0 }
 0x10d   :  { %v440_v33 = vmul.f32 1.442695, %v430_v28 }
 0x10e   :  { %v448_v29 = vmul.f32 1.442695, %v434_v26  ;;  %1100 = vpow2.f32 %v450_v25  ;;  %v497_v15 = vpop.permute.xlu1 %496 }
 0x10f   :  { %1102 = vpow2.f32 %v444_v24 }
 0x110   :  { %1104 = vpow2.f32 %v448_v29 }
 0x111   :  { %1106 = vpow2.f32 %v442_v31 }
 0x112   :  { %1108 = vpow2.f32 %v440_v33  ;;  %v487_v31 = vpop.permute.xlu1 %486 }
 0x113   :  { %1110 = vpow2.f32 %v438_v34 }
 0x114   :  { %1112 = vpow2.f32 %v436_v35 }
 0x117   :  { %v1099_v36 = vpop.eup %1098 }
 0x118   :  { %v882_v43 = vadd.f32 -1.0, %v1099_v36 }
 0x11a   :  { %v465_v48 = vsel %vm425_vm4, %v417_v3, %v882_v43  ;;  %v702_v3 = vld [vmem:[%s1553_s7] sm:$0xff] }
 0x11b   :  { %v1101_v37 = vpop.eup %1100  ;;  %1091 = vmatprep.mubr.msk.f32.mxu1 %vm524_vm1, %v702_v3 }
 0x11c   :  { %v1103_v38 = vpop.eup %1102  ;;  %v884_v39 = vadd.f32 -1.0, %v1101_v37 }
 0x11d   :  { %v1105_v40 = vpop.eup %1104  ;;  %v881_v46 = vadd.f32 -1.0, %v1103_v38 }
 0x11e   :  { %v467_v41 = vsel %vm427_vm2, %v419_v13, %v884_v39  ;;  %v883_v42 = vadd.f32 -1.0, %v1105_v40  ;;  %v1107_v44 = vpop.eup %1106 }
 0x11f   :  { %1047 = vmatprep.subr.mxu0 %v467_v41  ;;  %v1109_v47 = vpop.eup %1108  ;;  %v880_v49 = vadd.f32 -1.0, %v1107_v44  ;;  %v464_v51 = vsel %vm424_vm5, %v1462_v7, %v881_v46  ;;  %v512_v7 = vpop.permute.xlu0 %511 }
 0x120   :  { %1048 = vmatpush3.msra.mxu0 %v467_v41  ;;  %v466_v45 = vsel %vm426_vm3, %v418_v20, %v883_v42  ;;  %v1111_v50 = vpop.eup %1110  ;;  %v879_v52 = vadd.f32 -1.0, %v1109_v47 }
 0x121   :  { %1049 = vmatprep.subr.mxu0 %v466_v45  ;;  %v1113_v53 = vpop.eup %1112  ;;  %v463_v54 = vsel %vm423_vm6, %v1465_v12, %v880_v49  ;;  %v878_v55 = vadd.f32 -1.0, %v1111_v50 }
 0x122   :  { %1050 = vmatpush3.msra.mxu0 %v466_v45  ;;  %v462_v56 = vsel %vm422_vm7, %v1467_v16, %v879_v52  ;;  %v877_v57 = vadd.f32 -1.0, %v1113_v53 }
 0x123   :  { %1051 = vmatprep.subr.mxu0 %v465_v48  ;;  %v461_v58 = vsel %vm421_vm8, %v1469_v21, %v878_v55  ;;  %v502_v12 = vpop.permute.xlu0 %501 }
 0x124   :  { %1052 = vmatpush3.msra.mxu0 %v465_v48  ;;  %v460_v59 = vsel %vm420_vm9, %v1472_v27, %v877_v57 }
 0x125   :  { %1053 = vmatprep.subr.mxu0 %v464_v51 }
 0x126   :  { %1054 = vmatpush3.msra.mxu0 %v464_v51 }
 0x127   :  { %1055 = vmatprep.subr.mxu0 %v463_v54  ;;  %v492_v24 = vpop.permute.xlu0 %491 }
 0x128   :  { %1056 = vmatpush3.msra.mxu0 %v463_v54 }
 0x129   :  { %1057 = vmatprep.subr.mxu0 %v462_v56 }
 0x12a   :  { %1058 = vmatpush3.msra.mxu0 %v462_v56 }
 0x12b   :  { %1059 = vmatprep.subr.mxu0 %v461_v58 }
 0x12c   :  { %1060 = vmatpush3.msra.mxu0 %v461_v58 }
 0x12d   :  { %1061 = vmatprep.subr.mxu0 %v460_v59 }
 0x12e   :  { %1062 = vmatpush3.msra.mxu0 %v460_v59 }
 0x12f   :  { %1064 = vmatmul.mubr.msk.f32.vlgmr.msra.gmra.mxu0 %vm524_vm1, %v469_v60 }
 0x130   :  { %1066 = vmatprep.mubr.msk.f32.mxu0 %vm524_vm1, %v470_v61 }
 0x133   :  { %1067 = vmatmul.mubr.msk.f32.gmra.mxu0 %vm524_vm1, %v471_v62 }
 0x134   :  { %1069 = vmatprep.mubr.msk.f32.mxu0 %vm524_vm1, %v472_v63 }
 0x137   :  { %1070 = vmatmul.mubr.msk.f32.gmra.mxu0 %vm524_vm1, %v473_v0 }
 0x138   :  { %1072 = vmatprep.mubr.msk.f32.mxu0 %vm524_vm1, %v474_v1 }
 0x13b   :  { %1073 = vmatmul.mubr.msk.f32.gmra.mxu0 %vm524_vm1, %v475_v2 }
 0x1ef   :  { %v1065_v6 = vpop.f32.mrf.mxu0 }
 0x1f0   :  { %v1523_v27 = vadd.f32 %v1065_v6, %v492_v24 }
 0x1f1   :  { %v615_v8 = vpop.f32.mrf.mxu0 }
 0x1f2   :  { %v1526_v33 = vadd.f32 %v615_v8, %v487_v31  ;;  %v663_v37 = vmin.f32 %v1523_v27, 0.0  ;;  %vm655_vm0 = vcmp.gt.f32.partialorder %v1523_v27, 0.0  ;;  %v709_v8 = vpop.permute.xlu0 %708 }
 0x1f3   :  { %v1068_v10 = vpop.f32.mrf.mxu0 }
 0x1f4   :  { %v1519_v17 = vadd.f32 %v1068_v10, %v502_v12  ;;  %v662_v40 = vmin.f32 %v1526_v33, 0.0  ;;  %v672_v42 = vmul.f32 1.442695, %v663_v37  ;;  %vm654_vm2 = vcmp.gt.f32.partialorder %v1526_v33, 0.0 }
 0x1f5   :  { %v625_v11 = vpop.f32.mrf.mxu0 }
 0x1f6   :  { %v1521_v21 = vadd.f32 %v625_v11, %v497_v15  ;;  %v665_v28 = vmin.f32 %v1519_v17, 0.0  ;;  %v670_v43 = vmul.f32 1.442695, %v662_v40  ;;  %vm657_vm14 = vcmp.gt.f32.partialorder %v1519_v17, 0.0 }
 0x1f7   :  { %v1071_v13 = vpop.f32.mrf.mxu0 }
 0x1f8   :  { %v641_v14 = vadd.f32 %v1071_v13, %v512_v7  ;;  %v664_v34 = vmin.f32 %v1521_v21, 0.0  ;;  %v676_v38 = vmul.f32 1.442695, %v665_v28  ;;  %vm656_vm15 = vcmp.gt.f32.partialorder %v1521_v21, 0.0 }
 0x1f9   :  { %v635_v16 = vpop.f32.mrf.mxu0 }
 0x1fa   :  { %v667_v18 = vmin.f32 %v641_v14, 0.0  ;;  %v636_v19 = vadd.f32 %v635_v16, %v507_v9  ;;  %v674_v41 = vmul.f32 1.442695, %v664_v34  ;;  %vm659_vm12 = vcmp.gt.f32.partialorder %v641_v14, 0.0 }
 0x1fb   :  { %v1074_v20 = vpop.f32.mrf.mxu0 }
 0x1fc   :  { %v666_v22 = vmin.f32 %v636_v19, 0.0  ;;  %v651_v23 = vadd.f32 %v1074_v20, %v522_v4  ;;  %v680_v25 = vmul.f32 1.442695, %v667_v18  ;;  %vm658_vm13 = vcmp.gt.f32.partialorder %v636_v19, 0.0  ;;  %v703_v4 = vld [vmem:[%s1553_s7 + $0x8] sm:$0xff]  ;;  %s1161_s7 = smov [#allocation2]  }
 0x1fd   :  { %v645_v26 = vpop.f32.mrf.mxu0  ;;  %s829_s26 = sshll.u32 %s1161_s7, 4  ;;  %s830_s26 = int_to_ptr.vmem [resolvable:$true] %s829_s26 }
 0x1fe   :  { %v669_v29 = vmin.f32 %v651_v23, 0.0  ;;  %v646_v30 = vadd.f32 %v645_v26, %v517_v5  ;;  %v678_v32 = vmul.f32 1.442695, %v666_v22  ;;  %1114 = vpow2.f32 %v680_v25  ;;  %v714_v5 = vpop.permute.xlu1 %713  ;;  %s1138_s1 = scalar_lea.vmem %s830_s26, 16  ;;  %s1142_s27 = scalar_lea.vmem %s830_s26, 32 }
 0x1ff   :  { %vm661_vm10 = vcmp.gt.f32.partialorder %v651_v23, 0.0  ;;  %p1139_p0 = scmp.ne.s32.totalorder %s830_s26, %s1138_s1  ;;  %p1143_p1 = scmp.lt.s32.totalorder %s830_s26, %s830_s26 }
 0x200   :  { %v684_v35 = vmul.f32 1.442695, %v669_v29  ;;  %v668_v36 = vmin.f32 %v646_v30, 0.0  ;;  %vm660_vm11 = vcmp.gt.f32.partialorder %v646_v30, 0.0  ;;  %p1144_p2 = scmp.lt.s32.totalorder %s1142_s27, %s1138_s1 }
 0x202   :  { %1116 = vpow2.f32 %v684_v35  ;;  %v682_v39 = vmul.f32 1.442695, %v668_v36  ;;  %p1145_p3 = por %p1144_p2, %p1143_p1 }
 0x203   :  { %1118 = vpow2.f32 %v678_v32 }
 0x204   :  { %1120 = vpow2.f32 %v682_v39  ;;  %p1146_p4 = pnand %p1145_p3, %p1139_p0 }
 0x205   :  { %1122 = vpow2.f32 %v676_v38 }
 0x206   :  { %1124 = vpow2.f32 %v674_v41 }
 0x207   :  { %1126 = vpow2.f32 %v672_v42 }
 0x208   :  { %1128 = vpow2.f32 %v670_v43 }
 0x20b   :  { %v1115_v44 = vpop.eup %1114 }
 0x20c   :  { %v898_v51 = vadd.f32 -1.0, %v1115_v44 }
 0x20e   :  { %v699_v56 = vsel %vm659_vm12, %v641_v14, %v898_v51 }
 0x20f   :  { %v1117_v45 = vpop.eup %1116 }
 0x210   :  { %v1119_v46 = vpop.eup %1118  ;;  %v900_v47 = vadd.f32 -1.0, %v1117_v45 }
 0x211   :  { %v1121_v48 = vpop.eup %1120  ;;  %v897_v54 = vadd.f32 -1.0, %v1119_v46 }
 0x212   :  { %v701_v49 = vsel %vm661_vm10, %v651_v23, %v900_v47  ;;  %v899_v50 = vadd.f32 -1.0, %v1121_v48  ;;  %v1123_v52 = vpop.eup %1122 }
 0x213   :  { %1075 = vmatprep.subr.mxu1 %v701_v49  ;;  %v1125_v55 = vpop.eup %1124  ;;  %v896_v57 = vadd.f32 -1.0, %v1123_v52  ;;  %v698_v59 = vsel %vm658_vm13, %v636_v19, %v897_v54 }
 0x214   :  { %1076 = vmatpush3.msra.mxu1 %v701_v49  ;;  %v700_v53 = vsel %vm660_vm11, %v646_v30, %v899_v50  ;;  %v1127_v58 = vpop.eup %1126  ;;  %v895_v60 = vadd.f32 -1.0, %v1125_v55 }
 0x215   :  { %1077 = vmatprep.subr.mxu1 %v700_v53  ;;  %v1129_v61 = vpop.eup %1128  ;;  %v697_v62 = vsel %vm657_vm14, %v1519_v17, %v896_v57  ;;  %v894_v63 = vadd.f32 -1.0, %v1127_v58 }
 0x216   :  { %1078 = vmatpush3.msra.mxu1 %v700_v53  ;;  %v696_v0 = vsel %vm656_vm15, %v1521_v21, %v895_v60  ;;  %v893_v1 = vadd.f32 -1.0, %v1129_v61 }
 0x217   :  { %1079 = vmatprep.subr.mxu1 %v699_v56  ;;  %v695_v2 = vsel %vm655_vm0, %v1523_v27, %v894_v63 }
 0x218   :  { %1080 = vmatpush3.msra.mxu1 %v699_v56  ;;  %v694_v3 = vsel %vm654_vm2, %v1526_v33, %v893_v1 }
 0x219   :  { %1081 = vmatprep.subr.mxu1 %v698_v59 }
 0x21a   :  { %1082 = vmatpush3.msra.mxu1 %v698_v59 }
 0x21b   :  { %1083 = vmatprep.subr.mxu1 %v697_v62 }
 0x21c   :  { %1084 = vmatpush3.msra.mxu1 %v697_v62 }
 0x21d   :  { %1085 = vmatprep.subr.mxu1 %v696_v0 }
 0x21e   :  { %1086 = vmatpush3.msra.mxu1 %v696_v0 }
 0x21f   :  { %1087 = vmatprep.subr.mxu1 %v695_v2 }
 0x220   :  { %1088 = vmatpush3.msra.mxu1 %v695_v2 }
 0x221   :  { %1089 = vmatprep.subr.mxu1 %v694_v3 }
 0x222   :  { %1090 = vmatpush3.msra.mxu1 %v694_v3 }
 0x223   :  { %1092 = vmatmul.mubr.msk.f32.vlgmr.msra.gmra.mxu1 %vm524_vm1, %v703_v4 }
 0x2e3   :  { %v1093_v6 = vpop.f32.mrf.mxu1 }
 0x2e4   :  { %v794_v7 = vadd.f32 %v1093_v6, %v714_v5 }
 0x2e5   :  { %v788_v9 = vpop.f32.mrf.mxu1 }
 0x2e6   :  { %v800_v10 = vmin.f32 %v794_v7, 0.0  ;;  %v789_v11 = vadd.f32 %v788_v9, %v709_v8  ;;  %vm798_vm3 = vcmp.gt.f32.partialorder %v794_v7, 0.0 }
 0x2e8   :  { %v803_v12 = vmul.f32 1.442695, %v800_v10  ;;  %v799_v13 = vmin.f32 %v789_v11, 0.0  ;;  %vm797_vm4 = vcmp.gt.f32.partialorder %v789_v11, 0.0 }
 0x2ea   :  { %1130 = vpow2.f32 %v803_v12  ;;  %v801_v14 = vmul.f32 1.442695, %v799_v13 }
 0x2ec   :  { %1132 = vpow2.f32 %v801_v14 }
 0x2f7   :  { %v1131_v15 = vpop.eup %1130 }
 0x2f8   :  { %v904_v16 = vadd.f32 -1.0, %v1131_v15 }
 0x2f9   :  { %v1133_v17 = vpop.eup %1132 }
 0x2fa   :  { %v903_v18 = vadd.f32 -1.0, %v1133_v17  ;;  %v808_v19 = vsel %vm798_vm3, %v794_v7, %v904_v16 }
 0x2fc   :  { %v807_v20 = vsel %vm797_vm4, %v789_v11, %v903_v18 }
 0x2fd   :  { %v809_v21 = vmul.f32 %v808_v19, %v807_v20 }
 0x2ff   :  { %v810_v22 = vrot.slane %v809_v21, 4 }
 0x301   :  { %v811_v23 = vadd.f32 %v810_v22, %v809_v21 }
 0x303   :  { %v812_v24 = vrot.slane %v811_v23, 2 }
 0x305   :  { %v813_v25 = vadd.f32 %v812_v24, %v811_v23 }
 0x307   :  { %v814_v26 = vrot.slane %v813_v25, 1 }
 0x309   :  { %v815_v27 = vadd.f32 %v814_v26, %v813_v25 }
 0x30b   :  { %v816_v28 = vsub.f32 0.0, %v815_v27 }
 0x30d   :  { %v817_v29 = vmul.f32 1.442695, %v816_v28 }
 0x30f   :  { %1134 = vpow2.f32 %v817_v29 }
 0x31c   :  { %v1135_v30 = vpop.eup %1134 }
 0x31d   :  { %v819_v31 = vadd.f32 1.0, %v1135_v30 }
 0x31f   :  { %1136 = vrcp.f32 %v819_v31 }
 0x32c   :  { %v1137_v32 = vpop.eup %1136 }
 0x32d   :  { %822 = vst [vmem:[#allocation2] sm:$0x1] %v1137_v32 }
 0x32e   :  { %1149 = shalt.err (!%p1146_p4)
}
 0x32f   :  { %832 = dma.vmem_to_hbm [thread:$0]  %s830_s26, 16, %s1555_s9, [#allocation3]  }
 0x330   :  { %1158 = dma.done.wait [#allocation3], 16  }
 0x331   :  { %1159 = vsyncadd [#allocation3], 4294967280 }
 0x332   :  { %836 = vsyncpa [#allocation3], 1 }

</bundles_post_ra>
